<compile_context>
chip_gen: v7x
topology: tpu7x:2x2x1
jax: 0.10.0
libtpu: 0.0.40
codegen_flags: <defaults>
</compile_context>

<pallas_src>
import functools

import jax
import jax.numpy as jnp
from jax.experimental import pallas as pl
from jax.experimental.pallas import tpu as pltpu

K_IN = 1000    # contraction dim (module input features)
K_PAD = 1024   # contraction dim, padded
HID = 512      # hidden dim
N_OUT = 3      # real output dim
N_PAD = 128    # output dim, padded (lane-dense stores)


def _mlp_kernel(x_ref, w1_ref, b1_ref, w2_ref, b2_ref, o_ref):
    # x_ref: [TM, 1024] bf16, w1_ref: [1024, 512] bf16, b1_ref: [1, 512] f32
    # w2_ref: [512, 128] bf16, b2_ref: [1, 128] f32, o_ref: [TM, 128] bf16
    h = jnp.dot(x_ref[...], w1_ref[...],
                preferred_element_type=jnp.float32)          # MXU, f32 acc
    h = jnp.maximum(h + b1_ref[...], 0.0)                    # bias + ReLU (f32)
    # Dropout(0.5): identity in eval mode.
    logits = jnp.dot(h.astype(jnp.bfloat16), w2_ref[...],
                     preferred_element_type=jnp.float32)      # MXU, f32 acc
    logits = logits + b2_ref[...]
    o_ref[...] = jax.nn.sigmoid(logits).astype(o_ref.dtype)   # EUP/VPU f32 -> bf16 store


def _round_up(v, m):
    return ((v + m - 1) // m) * m


def _pick_tm(B, tm_max):
    """Batch-tile selection: multiple of 16; >=2 grid steps when B > 128
    (feeds both v7x TensorCores) but never below 128 rows per step."""
    if B <= 128:
        return max(16, _round_up(B, 16))
    tm = min(tm_max, _round_up(pl.cdiv(B, 2), 16))
    return max(128, min(tm, _round_up(B, 16)))


def prepare_params(w1, b1, w2, b2):
    """One-time pad+cast of the weights (hoisted out of the per-call path)."""
    w1_p = jnp.pad(w1, ((0, K_PAD - w1.shape[0]), (0, 0))).astype(jnp.bfloat16)
    b1_p = jnp.reshape(b1, (1, HID)).astype(jnp.float32)
    w2_p = jnp.pad(w2, ((0, 0), (0, N_PAD - w2.shape[1]))).astype(jnp.bfloat16)
    b2_p = jnp.pad(jnp.reshape(b2, (1, -1)),
                   ((0, 0), (0, N_PAD - w2.shape[1]))).astype(jnp.float32)
    return w1_p, b1_p, w2_p, b2_p


def prepare_x(x):
    """One-time upstream pad+cast of activations: [B,1000] f32 -> [B,1024] bf16."""
    B, K = x.shape
    return jnp.pad(x, ((0, 0), (0, K_PAD - K))).astype(jnp.bfloat16)


@functools.partial(jax.jit, static_argnames=("tm",))
def classification_forward(x, w1_p, b1_p, w2_p, b2_p, *, tm=512):
    """x: [B, 1000] f32  OR pre-prepared [B, 1024] bf16 (preferred).
    w1_p/b1_p/w2_p/b2_p: outputs of prepare_params().
    Returns sigmoid(relu(x@w1+b1)@w2+b2): [B, 3] f32 (eval-mode dropout)."""
    B = x.shape[0]

    # Fallback: accept raw f32 inputs; the fast path is bf16 prepared upstream.
    if x.shape[1] != K_PAD or x.dtype != jnp.bfloat16:
        x = prepare_x(x)

    TM = _pick_tm(B, tm)
    B_pad = pl.cdiv(B, TM) * TM
    if B_pad != B:
        x = jnp.pad(x, ((0, B_pad - B), (0, 0)))

    grid = (B_pad // TM,)

    cost = pl.CostEstimate(
        flops=2 * B_pad * K_PAD * HID + 2 * B_pad * HID * N_PAD,
        transcendentals=B_pad * N_PAD,
        bytes_accessed=(B_pad * K_PAD * 2            # x (bf16)
                        + K_PAD * HID * 2            # w1 (bf16)
                        + HID * N_PAD * 2            # w2 (bf16)
                        + HID * 4 + N_PAD * 4        # biases (f32)
                        + B_pad * N_PAD * 2),        # out (bf16)
    )

    out = pl.pallas_call(
        _mlp_kernel,
        out_shape=jax.ShapeDtypeStruct((B_pad, N_PAD), jnp.bfloat16),
        grid_spec=pltpu.PrefetchScalarGridSpec(
            num_scalar_prefetch=0,
            grid=grid,
            in_specs=[
                # x tiles stream over the batch axis.
                pl.BlockSpec((TM, K_PAD), lambda i: (i, 0)),
                # Weights/biases: constant block index -> DMA'd once, stay
                # VMEM-resident across all batch tiles.
                pl.BlockSpec((K_PAD, HID), lambda i: (0, 0)),
                pl.BlockSpec((1, HID), lambda i: (0, 0)),
                pl.BlockSpec((HID, N_PAD), lambda i: (0, 0)),
                pl.BlockSpec((1, N_PAD), lambda i: (0, 0)),
            ],
            out_specs=pl.BlockSpec((TM, N_PAD), lambda i: (i, 0)),
        ),
        compiler_params=pltpu.CompilerParams(
            dimension_semantics=("parallel",),   # shard batch tiles across TCs
            vmem_limit_bytes=32 << 20,
        ),
        cost_estimate=cost,
    )(x, w1_p, b1_p, w2_p, b2_p)

    # Drop batch padding and zero-padded output columns (they hold 0.5);
    # tiny [B, 3] cast back to f32 to preserve the module's output dtype.
    return out[:B, :N_OUT].astype(jnp.float32)


def init_params(key):
    # Deterministic init mimicking torch.nn.Linear's uniform(-1/sqrt(fan_in), +)
    k1, k2, k3, k4 = jax.random.split(key, 4)
    bound1 = 1.0 / jnp.sqrt(K_IN)
    bound2 = 1.0 / jnp.sqrt(HID)
    w1 = jax.random.uniform(k1, (K_IN, HID), jnp.float32, -bound1, bound1)
    b1 = jax.random.uniform(k2, (HID,), jnp.float32, -bound1, bound1)
    w2 = jax.random.uniform(k3, (HID, N_OUT), jnp.float32, -bound2, bound2)
    b2 = jax.random.uniform(k4, (N_OUT,), jnp.float32, -bound2, bound2)
    return w1, b1, w2, b2


if __name__ == "__main__":
    key = jax.random.PRNGKey(0)
    kx, kp = jax.random.split(key)
    B = 8
    x = jax.random.normal(kx, (B, K_IN), dtype=jnp.float32)
    w1, b1, w2, b2 = init_params(kp)

    # One-time preparation (hoisted out of the per-call path).
    w1_p, b1_p, w2_p, b2_p = prepare_params(w1, b1, w2, b2)
    x_p = prepare_x(x)

    out = classification_forward(x_p, w1_p, b1_p, w2_p, b2_p)
    jax.block_until_ready(out)

    # Reference (f32, eval-mode dropout = identity). bf16 matmul inputs with
    # f32 accumulation + bf16 output store -> loose tolerance.
    ref = jax.nn.sigmoid(jnp.maximum(x @ w1 + b1[None, :], 0.0) @ w2 + b2[None, :])
    assert out.shape == (B, N_OUT)
    assert jnp.allclose(out, ref, atol=2e-2, rtol=2e-2), (
        float(jnp.max(jnp.abs(out - ref))))
    print("KERNEL_OK")
</pallas_src>

<mosaic_0001>
module attributes {stable_mosaic.version = 11 : i64} {
  func.func @_mlp_kernel(%arg0: i32, %arg1: memref<16x1024xbf16, #tpu.memory_space<vmem>>, %arg2: memref<1024x512xbf16, #tpu.memory_space<vmem>>, %arg3: memref<1x512xf32, #tpu.memory_space<vmem>>, %arg4: memref<512x128xbf16, #tpu.memory_space<vmem>>, %arg5: memref<1x128xf32, #tpu.memory_space<vmem>>, %arg6: memref<16x128xbf16, #tpu.memory_space<vmem>>) attributes {dimension_semantics = [#tpu.dimension_semantics<parallel>], iteration_bounds = array<i64: 1>, scalar_prefetch = 0 : i64, scratch_operands = 0 : i64, tpu.core_type = #tpu.core_type<tc>, window_params = [{transform_indices = @transform_0, window_bounds = array<i64: 16, 1024>}, {pipeline_mode = #tpu.pipeline_mode<synchronous>, transform_indices = @transform_1, window_bounds = array<i64: 1024, 512>}, {pipeline_mode = #tpu.pipeline_mode<synchronous>, transform_indices = @transform_2, window_bounds = array<i64: 1, 512>}, {pipeline_mode = #tpu.pipeline_mode<synchronous>, transform_indices = @transform_3, window_bounds = array<i64: 512, 128>}, {pipeline_mode = #tpu.pipeline_mode<synchronous>, transform_indices = @transform_4, window_bounds = array<i64: 1, 128>}, {transform_indices = @transform_5, window_bounds = array<i64: 16, 128>}]} {
    %c0 = arith.constant 0 : index
    %c0_0 = arith.constant 0 : index
    %0 = vector.load %arg1[%c0, %c0_0] : memref<16x1024xbf16, #tpu.memory_space<vmem>>, vector<16x1024xbf16>
    %c0_1 = arith.constant 0 : index
    %c0_2 = arith.constant 0 : index
    %1 = vector.load %arg2[%c0_1, %c0_2] : memref<1024x512xbf16, #tpu.memory_space<vmem>>, vector<1024x512xbf16>
    %cst = arith.constant dense<0.000000e+00> : vector<16x512xf32>
    %2 = tpu.matmul %0, %1, %cst {dimension_numbers = #tpu.dot_dimension_numbers<[1], [0], [0], [1], [0, 0, 1, 1], [], []>} : vector<16x1024xbf16>, vector<1024x512xbf16>, vector<16x512xf32> -> vector<16x512xf32>
    %c0_3 = arith.constant 0 : index
    %c0_4 = arith.constant 0 : index
    %3 = vector.load %arg3[%c0_3, %c0_4] : memref<1x512xf32, #tpu.memory_space<vmem>>, vector<1x512xf32>
    %4 = vector.broadcast %3 : vector<1x512xf32> to vector<16x512xf32>
    %5 = arith.addf %2, %4 : vector<16x512xf32>
    %cst_5 = arith.constant 0.000000e+00 : f32
    %6 = vector.broadcast %cst_5 : f32 to vector<16x512xf32>
    %7 = arith.maximumf %5, %6 : vector<16x512xf32>
    %8 = arith.truncf %7 : vector<16x512xf32> to vector<16x512xbf16>
    %c0_6 = arith.constant 0 : index
    %c0_7 = arith.constant 0 : index
    %9 = vector.load %arg4[%c0_6, %c0_7] : memref<512x128xbf16, #tpu.memory_space<vmem>>, vector<512x128xbf16>
    %cst_8 = arith.constant dense<0.000000e+00> : vector<16x128xf32>
    %10 = tpu.matmul %8, %9, %cst_8 {dimension_numbers = #tpu.dot_dimension_numbers<[1], [0], [0], [1], [0, 0, 1, 1], [], []>} : vector<16x512xbf16>, vector<512x128xbf16>, vector<16x128xf32> -> vector<16x128xf32>
    %c0_9 = arith.constant 0 : index
    %c0_10 = arith.constant 0 : index
    %11 = vector.load %arg5[%c0_9, %c0_10] : memref<1x128xf32, #tpu.memory_space<vmem>>, vector<1x128xf32>
    %12 = vector.broadcast %11 : vector<1x128xf32> to vector<16x128xf32>
    %13 = arith.addf %10, %12 : vector<16x128xf32>
    %14 = arith.negf %13 : vector<16x128xf32>
    %15 = math.exp %14 : vector<16x128xf32>
    %cst_11 = arith.constant 1.000000e+00 : f32
    %16 = vector.broadcast %cst_11 : f32 to vector<16x128xf32>
    %17 = arith.addf %16, %15 : vector<16x128xf32>
    %18 = arith.divf %16, %17 : vector<16x128xf32>
    %19 = arith.truncf %18 : vector<16x128xf32> to vector<16x128xbf16>
    %c0_12 = arith.constant 0 : index
    %c0_13 = arith.constant 0 : index
    %20 = vector.load %arg6[%c0_12, %c0_13] : memref<16x128xbf16, #tpu.memory_space<vmem>>, vector<16x128xbf16>
    tpu.vector_store %arg6[%c0_12, %c0_13], %19 {strides = array<i32>} : memref<16x128xbf16, #tpu.memory_space<vmem>>, vector<16x128xbf16>,
    return
  }
  func.func @transform_0(%arg0: i32) -> (i32, i32) {
    %c0_i32 = arith.constant 0 : i32
    %c0_i32_0 = arith.constant 0 : i32
    return %arg0, %c0_i32 : i32, i32
  }
  func.func @transform_1(%arg0: i32) -> (i32, i32) {
    %c0_i32 = arith.constant 0 : i32
    %c0_i32_0 = arith.constant 0 : i32
    %c0_i32_1 = arith.constant 0 : i32
    return %c0_i32, %c0_i32_0 : i32, i32
  }
  func.func @transform_2(%arg0: i32) -> (i32, i32) {
    %c0_i32 = arith.constant 0 : i32
    %c0_i32_0 = arith.constant 0 : i32
    %c0_i32_1 = arith.constant 0 : i32
    return %c0_i32, %c0_i32_0 : i32, i32
  }
  func.func @transform_3(%arg0: i32) -> (i32, i32) {
    %c0_i32 = arith.constant 0 : i32
    %c0_i32_0 = arith.constant 0 : i32
    %c0_i32_1 = arith.constant 0 : i32
    return %c0_i32, %c0_i32_0 : i32, i32
  }
  func.func @transform_4(%arg0: i32) -> (i32, i32) {
    %c0_i32 = arith.constant 0 : i32
    %c0_i32_0 = arith.constant 0 : i32
    %c0_i32_1 = arith.constant 0 : i32
    return %c0_i32, %c0_i32_0 : i32, i32
  }
  func.func @transform_5(%arg0: i32) -> (i32, i32) {
    %c0_i32 = arith.constant 0 : i32
    %c0_i32_0 = arith.constant 0 : i32
    return %arg0, %c0_i32 : i32, i32
  }
}

</mosaic_0001>

<bundles_post_ra>
// kernel: classification_forward.1
= control target key start
LH: loop header
LB: loop body
LE: loop exit
PB: predicated region body
PF: predicated region fallthrough
CT: control target
= control target key end

     0   :  { %10 = vsyncpa [#allocation3], 0  ;;  %s3363_s0 = inlined_call_operand.vmem [shape: bf16[16,1024], index: 0, kind: input, shape index: {}]   ;;  %s3364_s1 = inlined_call_operand.hbm [shape: bf16[1024,512], index: 1, kind: input, shape index: {}]   ;;  %s3365_s2 = inlined_call_operand.vmem [shape: f32[1,512], index: 2, kind: input, shape index: {}]   ;;  %s3366_s3 = inlined_call_operand.hbm [shape: bf16[512,128], index: 3, kind: input, shape index: {}]   ;;  %s3367_s4 = inlined_call_operand.vmem [shape: f32[1,128], index: 4, kind: input, shape index: {}]   ;;  %s3368_s5 = inlined_call_operand.vmem [shape: bf16[16,128], index: 5, kind: output, shape index: {}]  }
   0x1   :  { %11 = vsyncpa [#allocation5], 0  ;;  %s3246_s18 = smov [#allocation2]   ;;  %s3198_s22 = scalar_lea.hbm %s3364_s1, 32768 }
   0x2   :  { %s19_s19 = sshll.u32 %s3246_s18, 4  ;;  %p3199_p0 = scmp.ne.s32.totalorder %s3364_s1, %s3198_s22  ;;  %s20_s19 = int_to_ptr.vmem [resolvable:$true] %s19_s19 }
   0x3   :  { %p3202_p1 = scmp.lt.u32.totalorder %s3198_s22, %s3364_s1 }
   0x5   :  { %p3204_p2 = pnand %p3202_p1, %p3199_p0 }
   0x7   :  { %3207 = shalt.err (!%p3204_p2)
}
   0x8   :  { %s3208_s27 = scalar_lea.vmem %s20_s19, 32768  ;;  %p3213_p4 = scmp.lt.s32.totalorder %s20_s19, %s20_s19 }
   0x9   :  { %p3209_p3 = scmp.ne.s32.totalorder %s20_s19, %s3208_s27  ;;  %p3214_p5 = scmp.lt.s32.totalorder %s3208_s27, %s3208_s27 }
   0xb   :  { %p3215_p6 = por %p3214_p5, %p3213_p4 }
   0xd   :  { %p3216_p7 = pnand %p3215_p6, %p3209_p3 }
   0xf   :  { %3219 = shalt.err (!%p3216_p7)
}
  0x10   :  { %s3247_s28 = smov 256   ;;  %s3248_s29 = smov 16  }
  0x11   :  { %25 = dma.hbm_to_vmem [thread:$0]  %s3364_s1, 32768, %s20_s19, [#allocation3], %s3247_s28, %s3247_s28, %s3248_s29  }
  0x12   :  { %s3249_s7 = smov [#allocation4]   ;;  %s3220_s11 = scalar_lea.hbm %s3366_s3, 4096 }
  0x13   :  { %s33_s8 = sshll.u32 %s3249_s7, 4  ;;  %p3221_p8 = scmp.ne.s32.totalorder %s3366_s3, %s3220_s11  ;;  %s34_s8 = int_to_ptr.vmem [resolvable:$true] %s33_s8 }
  0x14   :  { %p3224_p9 = scmp.lt.u32.totalorder %s3220_s11, %s3366_s3 }
  0x16   :  { %p3226_p10 = pnand %p3224_p9, %p3221_p8 }
  0x18   :  { %3229 = shalt.err (!%p3226_p10)
}
  0x19   :  { %s3230_s16 = scalar_lea.vmem %s34_s8, 4096  ;;  %p3235_p12 = scmp.lt.s32.totalorder %s34_s8, %s34_s8 }
  0x1a   :  { %p3231_p11 = scmp.ne.s32.totalorder %s34_s8, %s3230_s16  ;;  %p3236_p13 = scmp.lt.s32.totalorder %s3230_s16, %s3230_s16 }
  0x1c   :  { %p3237_p0 = por %p3236_p13, %p3235_p12 }
  0x1e   :  { %p3238_p1 = pnand %p3237_p0, %p3231_p11 }
  0x20   :  { %3241 = shalt.err (!%p3238_p1)
}
  0x21   :  { %s3250_s1 = smov 64   ;;  %s3251_s17 = smov 4  }
  0x22   :  { %39 = dma.hbm_to_vmem [thread:$0]  %s3366_s3, 4096, %s34_s8, [#allocation5], %s3250_s1, %s3250_s1, %s3251_s17  }
  0x23   :  { %3242 = dma.done.wait [#allocation3], 32768  }
  0x24   :  { %3243 = vsyncadd [#allocation3], 4294934528 }
  0x25   :  { %3244 = dma.done.wait [#allocation5], 4096  }
  0x26   :  { %3245 = vsyncadd [#allocation5], 4294963200  ;;  %v2774_v0 = vld [vmem:[#allocation2 + $0x4] ss:$16 sps:$4 sm:$0xff]   ;;  %v2776_v1 = vld [vmem:[#allocation2 + $0xc] ss:$16 sps:$4 sm:$0xff]  }
  0x27   :  { %1655 = vmatprep.subr.bf16.mxu0 %v2774_v0  ;;  %v2778_v2 = vld [vmem:[#allocation2] ss:$16 sps:$4 sm:$0xff]   ;;  %v2779_v3 = vld [vmem:[#allocation2 + $0x8] ss:$16 sps:$4 sm:$0xff]   ;;  %1827 = vmatprep.subr.bf16.mxu1 %v2776_v1  ;;  %v2780_v4 = vld [vmem:[#allocation2 + $0x24] ss:$16 sps:$4 sm:$0xff]  }
  0x28   :  { %1656 = vmatpush1.bf16.msra.mxu0 %v2778_v2  ;;  %1828 = vmatpush1.bf16.msra.mxu1 %v2779_v3  ;;  %v2782_v5 = vld [vmem:[#allocation2 + $0x2c] ss:$16 sps:$4 sm:$0xff]   ;;  %v2784_v6 = vld [vmem:[#allocation2 + $0x20] ss:$16 sps:$4 sm:$0xff]   ;;  %v2785_v7 = vld [vmem:[#allocation2 + $0x28] ss:$16 sps:$4 sm:$0xff]  }
  0x29   :  { %1657 = vmatprep.subr.bf16.mxu0 %v2780_v4  ;;  %1829 = vmatprep.subr.bf16.mxu1 %v2782_v5  ;;  %v2786_v8 = vld [vmem:[#allocation2 + $0x44] ss:$16 sps:$4 sm:$0xff]   ;;  %v2788_v9 = vld [vmem:[#allocation2 + $0x4c] ss:$16 sps:$4 sm:$0xff]   ;;  %v2790_v10 = vld [vmem:[#allocation2 + $0x40] ss:$16 sps:$4 sm:$0xff]  }
  0x2a   :  { %v2791_v11 = vld [vmem:[#allocation2 + $0x48] ss:$16 sps:$4 sm:$0xff]   ;;  %v2792_v12 = vld [vmem:[#allocation2 + $0x64] ss:$16 sps:$4 sm:$0xff]   ;;  %v2794_v13 = vld [vmem:[#allocation2 + $0x6c] ss:$16 sps:$4 sm:$0xff]  }
  0x2b   :  { %v2796_v14 = vld [vmem:[#allocation2 + $0x60] ss:$16 sps:$4 sm:$0xff]   ;;  %v2797_v15 = vld [vmem:[#allocation2 + $0x68] ss:$16 sps:$4 sm:$0xff]   ;;  %v2798_v16 = vld [vmem:[#allocation2 + $0x84] ss:$16 sps:$4 sm:$0xff]  }
  0x2c   :  { %1658 = vmatpush1.bf16.msra.mxu0 %v2784_v6  ;;  %1830 = vmatpush1.bf16.msra.mxu1 %v2785_v7  ;;  %v2800_v17 = vld [vmem:[#allocation2 + $0x8c] ss:$16 sps:$4 sm:$0xff]   ;;  %v2802_v18 = vld [vmem:[#allocation2 + $0x80] ss:$16 sps:$4 sm:$0xff]   ;;  %v2803_v19 = vld [vmem:[#allocation2 + $0x88] ss:$16 sps:$4 sm:$0xff]  }
  0x2d   :  { %1659 = vmatprep.subr.bf16.mxu0 %v2786_v8  ;;  %1831 = vmatprep.subr.bf16.mxu1 %v2788_v9  ;;  %v2804_v20 = vld [vmem:[#allocation2 + $0xa4] ss:$16 sps:$4 sm:$0xff]   ;;  %v2806_v21 = vld [vmem:[#allocation2 + $0xac] ss:$16 sps:$4 sm:$0xff]   ;;  %v2808_v22 = vld [vmem:[#allocation2 + $0xa0] ss:$16 sps:$4 sm:$0xff]  }
  0x2e   :  { %v2809_v23 = vld [vmem:[#allocation2 + $0xa8] ss:$16 sps:$4 sm:$0xff]   ;;  %v2810_v24 = vld [vmem:[#allocation2 + $0xc4] ss:$16 sps:$4 sm:$0xff]   ;;  %v2812_v25 = vld [vmem:[#allocation2 + $0xcc] ss:$16 sps:$4 sm:$0xff]  }
  0x2f   :  { %v2814_v26 = vld [vmem:[#allocation2 + $0xc0] ss:$16 sps:$4 sm:$0xff]   ;;  %v2815_v27 = vld [vmem:[#allocation2 + $0xc8] ss:$16 sps:$4 sm:$0xff]   ;;  %v2816_v28 = vld [vmem:[#allocation2 + $0xe4] ss:$16 sps:$4 sm:$0xff]  }
  0x30   :  { %1660 = vmatpush1.bf16.msra.mxu0 %v2790_v10  ;;  %1832 = vmatpush1.bf16.msra.mxu1 %v2791_v11  ;;  %v2818_v29 = vld [vmem:[#allocation2 + $0xec] ss:$16 sps:$4 sm:$0xff]   ;;  %v2820_v30 = vld [vmem:[#allocation2 + $0xe0] ss:$16 sps:$4 sm:$0xff]   ;;  %v2821_v31 = vld [vmem:[#allocation2 + $0xe8] ss:$16 sps:$4 sm:$0xff]  }
  0x31   :  { %1661 = vmatprep.subr.bf16.mxu0 %v2792_v12  ;;  %1833 = vmatprep.subr.bf16.mxu1 %v2794_v13  ;;  %v2822_v32 = vld [vmem:[#allocation2 + $0x104] ss:$16 sps:$4 sm:$0xff]   ;;  %v2824_v33 = vld [vmem:[#allocation2 + $0x10c] ss:$16 sps:$4 sm:$0xff]   ;;  %v2826_v34 = vld [vmem:[#allocation2 + $0x100] ss:$16 sps:$4 sm:$0xff]  }
  0x32   :  { %v2827_v35 = vld [vmem:[#allocation2 + $0x108] ss:$16 sps:$4 sm:$0xff]   ;;  %v2828_v36 = vld [vmem:[#allocation2 + $0x124] ss:$16 sps:$4 sm:$0xff]   ;;  %v2830_v37 = vld [vmem:[#allocation2 + $0x12c] ss:$16 sps:$4 sm:$0xff]  }
  0x33   :  { %v2832_v38 = vld [vmem:[#allocation2 + $0x120] ss:$16 sps:$4 sm:$0xff]   ;;  %v2833_v39 = vld [vmem:[#allocation2 + $0x128] ss:$16 sps:$4 sm:$0xff]   ;;  %v2834_v40 = vld [vmem:[#allocation2 + $0x144] ss:$16 sps:$4 sm:$0xff]  }
  0x34   :  { %1662 = vmatpush1.bf16.msra.mxu0 %v2796_v14  ;;  %1834 = vmatpush1.bf16.msra.mxu1 %v2797_v15  ;;  %v2836_v41 = vld [vmem:[#allocation2 + $0x14c] ss:$16 sps:$4 sm:$0xff]   ;;  %v2838_v42 = vld [vmem:[#allocation2 + $0x140] ss:$16 sps:$4 sm:$0xff]   ;;  %v2839_v43 = vld [vmem:[#allocation2 + $0x148] ss:$16 sps:$4 sm:$0xff]  }
  0x35   :  { %1663 = vmatprep.subr.bf16.mxu0 %v2798_v16  ;;  %1835 = vmatprep.subr.bf16.mxu1 %v2800_v17  ;;  %v2840_v44 = vld [vmem:[#allocation2 + $0x164] ss:$16 sps:$4 sm:$0xff]   ;;  %v2842_v45 = vld [vmem:[#allocation2 + $0x16c] ss:$16 sps:$4 sm:$0xff]   ;;  %v2844_v48 = vld [vmem:[#allocation2 + $0x160] ss:$16 sps:$4 sm:$0xff]  }
  0x36   :  { %v49_v46 = vld [vmem:[%s3363_s0] sm:$0xff]  ;;  %v2845_v49 = vld [vmem:[#allocation2 + $0x168] ss:$16 sps:$4 sm:$0xff]   ;;  %v2848_v52 = vld [vmem:[#allocation2 + $0x18c] ss:$16 sps:$4 sm:$0xff]  }
  0x37   :  { %v53_v47 = vld [vmem:[%s3363_s0 + $0x20] sm:$0xff]  ;;  %v2851_v54 = vld [vmem:[#allocation2 + $0x188] ss:$16 sps:$4 sm:$0xff]   ;;  %v2854_v56 = vld [vmem:[#allocation2 + $0x1ac] ss:$16 sps:$4 sm:$0xff]  }
  0x38   :  { %1664 = vmatpush1.bf16.msra.mxu0 %v2802_v18  ;;  %1836 = vmatpush1.bf16.msra.mxu1 %v2803_v19  ;;  %v2385_v50 = vcombine.high %v49_v46, %v53_v47  ;;  %v2846_v51 = vld [vmem:[#allocation2 + $0x184] ss:$16 sps:$4 sm:$0xff]   ;;  %v2850_v53 = vld [vmem:[#allocation2 + $0x180] ss:$16 sps:$4 sm:$0xff]   ;;  %v2857_v58 = vld [vmem:[#allocation2 + $0x1a8] ss:$16 sps:$4 sm:$0xff]   ;;  %v2384_v5 = vcombine.low %v49_v46, %v53_v47 }
  0x39   :  { %1665 = vmatprep.subr.bf16.mxu0 %v2804_v20  ;;  %1837 = vmatprep.subr.bf16.mxu1 %v2806_v21  ;;  %v2852_v55 = vld [vmem:[#allocation2 + $0x1a4] ss:$16 sps:$4 sm:$0xff]   ;;  %v2856_v57 = vld [vmem:[#allocation2 + $0x1a0] ss:$16 sps:$4 sm:$0xff]   ;;  %v2860_v60 = vld [vmem:[#allocation2 + $0x1cc] ss:$16 sps:$4 sm:$0xff]  }
  0x3a   :  { %1687 = vmatprep.mubr.bf16.mxu0 %v2385_v50  ;;  %1859 = vmatprep.mubr.bf16.mxu1 %v2385_v50  ;;  %v2858_v59 = vld [vmem:[#allocation2 + $0x1c4] ss:$16 sps:$4 sm:$0xff]   ;;  %v2862_v61 = vld [vmem:[#allocation2 + $0x1c0] ss:$16 sps:$4 sm:$0xff]   ;;  %v2863_v62 = vld [vmem:[#allocation2 + $0x1c8] ss:$16 sps:$4 sm:$0xff]  }
  0x3b   :  { %v2864_v63 = vld [vmem:[#allocation2 + $0x1e4] ss:$16 sps:$4 sm:$0xff]   ;;  %v2866_v0 = vld [vmem:[#allocation2 + $0x1ec] ss:$16 sps:$4 sm:$0xff]   ;;  %v2868_v1 = vld [vmem:[#allocation2 + $0x1e0] ss:$16 sps:$4 sm:$0xff]  }
  0x3c   :  { %1666 = vmatpush1.bf16.msra.mxu0 %v2808_v22  ;;  %1838 = vmatpush1.bf16.msra.mxu1 %v2809_v23  ;;  %v2869_v2 = vld [vmem:[#allocation2 + $0x1e8] ss:$16 sps:$4 sm:$0xff]   ;;  %v2872_v3 = vld [vmem:[#allocation2 + $0x204] ss:$16 sps:$4 sm:$0xff]   ;;  %v2875_v4 = vld [vmem:[#allocation2 + $0x20c] ss:$16 sps:$4 sm:$0xff]  }
  0x3d   :  { %1667 = vmatprep.subr.bf16.mxu0 %v2810_v24  ;;  %1839 = vmatprep.subr.bf16.mxu1 %v2812_v25  ;;  %v2870_v6 = vld [vmem:[#allocation2 + $0x200] ss:$16 sps:$4 sm:$0xff]   ;;  %v2873_v7 = vld [vmem:[#allocation2 + $0x208] ss:$16 sps:$4 sm:$0xff]   ;;  %v2878_v8 = vld [vmem:[#allocation2 + $0x224] ss:$16 sps:$4 sm:$0xff]  }
  0x3e   :  { %v2881_v9 = vld [vmem:[#allocation2 + $0x22c] ss:$16 sps:$4 sm:$0xff]   ;;  %v2876_v10 = vld [vmem:[#allocation2 + $0x220] ss:$16 sps:$4 sm:$0xff]   ;;  %v2879_v11 = vld [vmem:[#allocation2 + $0x228] ss:$16 sps:$4 sm:$0xff]  }
  0x3f   :  { %v2884_v12 = vld [vmem:[#allocation2 + $0x244] ss:$16 sps:$4 sm:$0xff]   ;;  %v2887_v13 = vld [vmem:[#allocation2 + $0x24c] ss:$16 sps:$4 sm:$0xff]   ;;  %v2882_v14 = vld [vmem:[#allocation2 + $0x240] ss:$16 sps:$4 sm:$0xff]  }
  0x40   :  { %1668 = vmatpush1.bf16.msra.mxu0 %v2814_v26  ;;  %1840 = vmatpush1.bf16.msra.mxu1 %v2815_v27  ;;  %v2885_v15 = vld [vmem:[#allocation2 + $0x248] ss:$16 sps:$4 sm:$0xff]   ;;  %v2890_v16 = vld [vmem:[#allocation2 + $0x264] ss:$16 sps:$4 sm:$0xff]   ;;  %v2893_v17 = vld [vmem:[#allocation2 + $0x26c] ss:$16 sps:$4 sm:$0xff]  }
  0x41   :  { %1669 = vmatprep.subr.bf16.mxu0 %v2816_v28  ;;  %1841 = vmatprep.subr.bf16.mxu1 %v2818_v29  ;;  %v2888_v18 = vld [vmem:[#allocation2 + $0x260] ss:$16 sps:$4 sm:$0xff]   ;;  %v2891_v19 = vld [vmem:[#allocation2 + $0x268] ss:$16 sps:$4 sm:$0xff]   ;;  %v2896_v20 = vld [vmem:[#allocation2 + $0x284] ss:$16 sps:$4 sm:$0xff]  }
  0x42   :  { %v2899_v21 = vld [vmem:[#allocation2 + $0x28c] ss:$16 sps:$4 sm:$0xff]   ;;  %v2894_v22 = vld [vmem:[#allocation2 + $0x280] ss:$16 sps:$4 sm:$0xff]   ;;  %v2897_v23 = vld [vmem:[#allocation2 + $0x288] ss:$16 sps:$4 sm:$0xff]  }
  0x43   :  { %v2902_v24 = vld [vmem:[#allocation2 + $0x2a4] ss:$16 sps:$4 sm:$0xff]   ;;  %v2905_v25 = vld [vmem:[#allocation2 + $0x2ac] ss:$16 sps:$4 sm:$0xff]   ;;  %v2900_v26 = vld [vmem:[#allocation2 + $0x2a0] ss:$16 sps:$4 sm:$0xff]  }
  0x44   :  { %1670 = vmatpush1.bf16.msra.mxu0 %v2820_v30  ;;  %1842 = vmatpush1.bf16.msra.mxu1 %v2821_v31  ;;  %v2903_v27 = vld [vmem:[#allocation2 + $0x2a8] ss:$16 sps:$4 sm:$0xff]   ;;  %v2908_v28 = vld [vmem:[#allocation2 + $0x2c4] ss:$16 sps:$4 sm:$0xff]   ;;  %v2911_v29 = vld [vmem:[#allocation2 + $0x2cc] ss:$16 sps:$4 sm:$0xff]  }
  0x45   :  { %1671 = vmatprep.subr.bf16.mxu0 %v2822_v32  ;;  %1843 = vmatprep.subr.bf16.mxu1 %v2824_v33  ;;  %v3315_v30 = vld [vmem:[%s3363_s0 + $0x8] sm:$0xff]  ;;  %v2906_v32 = vld [vmem:[#allocation2 + $0x2c0] ss:$16 sps:$4 sm:$0xff]   ;;  %v2932_v47 = vld [vmem:[#allocation2 + $0x344] ss:$16 sps:$4 sm:$0xff]  }
  0x46   :  { %v3320_v31 = vld [vmem:[%s3363_s0 + $0x28] sm:$0xff] }
  0x47   :  { %v2909_v33 = vld [vmem:[#allocation2 + $0x2c8] ss:$16 sps:$4 sm:$0xff]  }
  0x48   :  { %1672 = vmatpush1.bf16.msra.mxu0 %v2826_v34  ;;  %1844 = vmatpush1.bf16.msra.mxu1 %v2827_v35  ;;  %v2387_v34 = vcombine.high %v3315_v30, %v3320_v31  ;;  %v2914_v35 = vld [vmem:[#allocation2 + $0x2e4] ss:$16 sps:$4 sm:$0xff]   ;;  %v2927_v46 = vld [vmem:[#allocation2 + $0x328] ss:$16 sps:$4 sm:$0xff]  }
  0x49   :  { %1673 = vmatprep.subr.bf16.mxu0 %v2828_v36  ;;  %1845 = vmatprep.subr.bf16.mxu1 %v2830_v37  ;;  %v2917_v36 = vld [vmem:[#allocation2 + $0x2ec] ss:$16 sps:$4 sm:$0xff]   ;;  %v2912_v37 = vld [vmem:[#allocation2 + $0x2e0] ss:$16 sps:$4 sm:$0xff]   ;;  %v2933_v50 = vld [vmem:[#allocation2 + $0x348] ss:$16 sps:$4 sm:$0xff]  }
  0x4c   :  { %1674 = vmatpush1.bf16.msra.mxu0 %v2832_v38  ;;  %1846 = vmatpush1.bf16.msra.mxu1 %v2833_v39  ;;  %v2915_v38 = vld [vmem:[#allocation2 + $0x2e8] ss:$16 sps:$4 sm:$0xff]   ;;  %v2920_v39 = vld [vmem:[#allocation2 + $0x304] ss:$16 sps:$4 sm:$0xff]  }
  0x4d   :  { %1675 = vmatprep.subr.bf16.mxu0 %v2834_v40  ;;  %1847 = vmatprep.subr.bf16.mxu1 %v2836_v41  ;;  %v2923_v40 = vld [vmem:[#allocation2 + $0x30c] ss:$16 sps:$4 sm:$0xff]   ;;  %v2918_v41 = vld [vmem:[#allocation2 + $0x300] ss:$16 sps:$4 sm:$0xff]  }
  0x50   :  { %1676 = vmatpush1.bf16.msra.mxu0 %v2838_v42  ;;  %1848 = vmatpush1.bf16.msra.mxu1 %v2839_v43  ;;  %v2921_v42 = vld [vmem:[#allocation2 + $0x308] ss:$16 sps:$4 sm:$0xff]   ;;  %v2926_v43 = vld [vmem:[#allocation2 + $0x324] ss:$16 sps:$4 sm:$0xff]  }
  0x51   :  { %1677 = vmatprep.subr.bf16.mxu0 %v2840_v44  ;;  %1849 = vmatprep.subr.bf16.mxu1 %v2842_v45  ;;  %v2929_v44 = vld [vmem:[#allocation2 + $0x32c] ss:$16 sps:$4 sm:$0xff]   ;;  %v2924_v45 = vld [vmem:[#allocation2 + $0x320] ss:$16 sps:$4 sm:$0xff]  }
  0x54   :  { %1678 = vmatpush1.bf16.msra.mxu0 %v2844_v48  ;;  %1850 = vmatpush1.bf16.msra.mxu1 %v2845_v49  ;;  %v2935_v48 = vld [vmem:[#allocation2 + $0x34c] ss:$16 sps:$4 sm:$0xff]   ;;  %v2930_v49 = vld [vmem:[#allocation2 + $0x340] ss:$16 sps:$4 sm:$0xff]  }
  0x55   :  { %1679 = vmatprep.subr.bf16.mxu0 %v2846_v51  ;;  %1851 = vmatprep.subr.bf16.mxu1 %v2848_v52  ;;  %v2938_v51 = vld [vmem:[#allocation2 + $0x364] ss:$16 sps:$4 sm:$0xff]   ;;  %v2941_v52 = vld [vmem:[#allocation2 + $0x36c] ss:$16 sps:$4 sm:$0xff]  }
  0x58   :  { %1680 = vmatpush1.bf16.msra.mxu0 %v2850_v53  ;;  %1852 = vmatpush1.bf16.msra.mxu1 %v2851_v54  ;;  %v2936_v53 = vld [vmem:[#allocation2 + $0x360] ss:$16 sps:$4 sm:$0xff]   ;;  %v2939_v54 = vld [vmem:[#allocation2 + $0x368] ss:$16 sps:$4 sm:$0xff]  }
  0x59   :  { %1681 = vmatprep.subr.bf16.mxu0 %v2852_v55  ;;  %1853 = vmatprep.subr.bf16.mxu1 %v2854_v56  ;;  %v2944_v55 = vld [vmem:[#allocation2 + $0x384] ss:$16 sps:$4 sm:$0xff]   ;;  %v2947_v56 = vld [vmem:[#allocation2 + $0x38c] ss:$16 sps:$4 sm:$0xff]  }
  0x5c   :  { %1682 = vmatpush1.bf16.msra.mxu0 %v2856_v57  ;;  %1854 = vmatpush1.bf16.msra.mxu1 %v2857_v58  ;;  %v2942_v57 = vld [vmem:[#allocation2 + $0x380] ss:$16 sps:$4 sm:$0xff]   ;;  %v2945_v58 = vld [vmem:[#allocation2 + $0x388] ss:$16 sps:$4 sm:$0xff]  }
  0x5d   :  { %1683 = vmatprep.subr.bf16.mxu0 %v2858_v59  ;;  %1855 = vmatprep.subr.bf16.mxu1 %v2860_v60  ;;  %v2950_v59 = vld [vmem:[#allocation2 + $0x3a4] ss:$16 sps:$4 sm:$0xff]   ;;  %v2953_v60 = vld [vmem:[#allocation2 + $0x3ac] ss:$16 sps:$4 sm:$0xff]  }
  0x60   :  { %1684 = vmatpush1.bf16.msra.mxu0 %v2862_v61  ;;  %1856 = vmatpush1.bf16.msra.mxu1 %v2863_v62  ;;  %v2948_v61 = vld [vmem:[#allocation2 + $0x3a0] ss:$16 sps:$4 sm:$0xff]   ;;  %v2951_v62 = vld [vmem:[#allocation2 + $0x3a8] ss:$16 sps:$4 sm:$0xff]  }
  0x61   :  { %1685 = vmatprep.subr.bf16.mxu0 %v2864_v63  ;;  %1857 = vmatprep.subr.bf16.mxu1 %v2866_v0  ;;  %v2956_v63 = vld [vmem:[#allocation2 + $0x3c4] ss:$16 sps:$4 sm:$0xff]   ;;  %v2959_v0 = vld [vmem:[#allocation2 + $0x3cc] ss:$16 sps:$4 sm:$0xff]  }
  0x64   :  { %1686 = vmatpush1.bf16.msra.mxu0 %v2868_v1  ;;  %1858 = vmatpush1.bf16.msra.mxu1 %v2869_v2  ;;  %v2954_v1 = vld [vmem:[#allocation2 + $0x3c0] ss:$16 sps:$4 sm:$0xff]   ;;  %v2957_v2 = vld [vmem:[#allocation2 + $0x3c8] ss:$16 sps:$4 sm:$0xff]  }
  0x65   :  { %1698 = vmatprep.subr.bf16.mxu0 %v2872_v3  ;;  %1870 = vmatprep.subr.bf16.mxu1 %v2875_v4  ;;  %v2962_v3 = vld [vmem:[#allocation2 + $0x3e4] ss:$16 sps:$4 sm:$0xff]   ;;  %v2965_v4 = vld [vmem:[#allocation2 + $0x3ec] ss:$16 sps:$4 sm:$0xff]  }
  0x67   :  { %1688 = vmatmul.mubr.bf16.vlgmr.msra.gmra.mrb[0].mxu0 %v2384_v5  ;;  %1860 = vmatmul.mubr.bf16.vlgmr.msra.gmra.mrb[0].mxu1 %v2384_v5  ;;  %v2960_v5 = vld [vmem:[#allocation2 + $0x3e0] ss:$16 sps:$4 sm:$0xff]  }
  0x68   :  { %1699 = vmatpush1.bf16.msra.mxu0 %v2870_v6  ;;  %1871 = vmatpush1.bf16.msra.mxu1 %v2873_v7  ;;  %v2963_v6 = vld [vmem:[#allocation2 + $0x3e8] ss:$16 sps:$4 sm:$0xff]   ;;  %v2968_v7 = vld [vmem:[#allocation2 + $0x404] ss:$16 sps:$4 sm:$0xff]  }
  0x69   :  { %1700 = vmatprep.subr.bf16.mxu0 %v2878_v8  ;;  %1872 = vmatprep.subr.bf16.mxu1 %v2881_v9  ;;  %v2971_v8 = vld [vmem:[#allocation2 + $0x40c] ss:$16 sps:$4 sm:$0xff]   ;;  %v2386_v9 = vcombine.low %v3315_v30, %v3320_v31  ;;  %v2993_v30 = vld [vmem:[#allocation2 + $0x488] ss:$16 sps:$4 sm:$0xff]   ;;  %v2998_v31 = vld [vmem:[#allocation2 + $0x4a4] ss:$16 sps:$4 sm:$0xff]  }
  0x6a   :  { %1730 = vmatprep.mubr.bf16.mxu0 %v2387_v34  ;;  %1902 = vmatprep.mubr.bf16.mxu1 %v2387_v34  ;;  %v2999_v34 = vld [vmem:[#allocation2 + $0x4a8] ss:$16 sps:$4 sm:$0xff]  }
  0x6c   :  { %1701 = vmatpush1.bf16.msra.mxu0 %v2876_v10  ;;  %1873 = vmatpush1.bf16.msra.mxu1 %v2879_v11  ;;  %v2966_v10 = vld [vmem:[#allocation2 + $0x400] ss:$16 sps:$4 sm:$0xff]   ;;  %v2969_v11 = vld [vmem:[#allocation2 + $0x408] ss:$16 sps:$4 sm:$0xff]  }
  0x6d   :  { %1702 = vmatprep.subr.bf16.mxu0 %v2884_v12  ;;  %1874 = vmatprep.subr.bf16.mxu1 %v2887_v13  ;;  %v2974_v12 = vld [vmem:[#allocation2 + $0x424] ss:$16 sps:$4 sm:$0xff]   ;;  %v2977_v13 = vld [vmem:[#allocation2 + $0x42c] ss:$16 sps:$4 sm:$0xff]  }
  0x70   :  { %1703 = vmatpush1.bf16.msra.mxu0 %v2882_v14  ;;  %1875 = vmatpush1.bf16.msra.mxu1 %v2885_v15  ;;  %v3329_v14 = vld [vmem:[%s3363_s0 + $0x10] sm:$0xff] }
  0x71   :  { %1704 = vmatprep.subr.bf16.mxu0 %v2890_v16  ;;  %1876 = vmatprep.subr.bf16.mxu1 %v2893_v17  ;;  %v3334_v15 = vld [vmem:[%s3363_s0 + $0x30] sm:$0xff] }
  0x72   :  { %v2389_v16 = vcombine.high %v3329_v14, %v3334_v15  ;;  %v2972_v17 = vld [vmem:[#allocation2 + $0x420] ss:$16 sps:$4 sm:$0xff]  }
  0x74   :  { %1705 = vmatpush1.bf16.msra.mxu0 %v2888_v18  ;;  %1877 = vmatpush1.bf16.msra.mxu1 %v2891_v19  ;;  %v2975_v18 = vld [vmem:[#allocation2 + $0x428] ss:$16 sps:$4 sm:$0xff]   ;;  %v2980_v19 = vld [vmem:[#allocation2 + $0x444] ss:$16 sps:$4 sm:$0xff]  }
  0x75   :  { %1706 = vmatprep.subr.bf16.mxu0 %v2896_v20  ;;  %1878 = vmatprep.subr.bf16.mxu1 %v2899_v21  ;;  %v2983_v20 = vld [vmem:[#allocation2 + $0x44c] ss:$16 sps:$4 sm:$0xff]   ;;  %v2978_v21 = vld [vmem:[#allocation2 + $0x440] ss:$16 sps:$4 sm:$0xff]  }
  0x78   :  { %1707 = vmatpush1.bf16.msra.mxu0 %v2894_v22  ;;  %1879 = vmatpush1.bf16.msra.mxu1 %v2897_v23  ;;  %v2981_v22 = vld [vmem:[#allocation2 + $0x448] ss:$16 sps:$4 sm:$0xff]   ;;  %v2986_v23 = vld [vmem:[#allocation2 + $0x464] ss:$16 sps:$4 sm:$0xff]  }
  0x79   :  { %1708 = vmatprep.subr.bf16.mxu0 %v2902_v24  ;;  %1880 = vmatprep.subr.bf16.mxu1 %v2905_v25  ;;  %v2989_v24 = vld [vmem:[#allocation2 + $0x46c] ss:$16 sps:$4 sm:$0xff]   ;;  %v2984_v25 = vld [vmem:[#allocation2 + $0x460] ss:$16 sps:$4 sm:$0xff]  }
  0x7c   :  { %1709 = vmatpush1.bf16.msra.mxu0 %v2900_v26  ;;  %1881 = vmatpush1.bf16.msra.mxu1 %v2903_v27  ;;  %v2987_v26 = vld [vmem:[#allocation2 + $0x468] ss:$16 sps:$4 sm:$0xff]   ;;  %v2992_v27 = vld [vmem:[#allocation2 + $0x484] ss:$16 sps:$4 sm:$0xff]  }
  0x7d   :  { %1710 = vmatprep.subr.bf16.mxu0 %v2908_v28  ;;  %1882 = vmatprep.subr.bf16.mxu1 %v2911_v29  ;;  %v2995_v28 = vld [vmem:[#allocation2 + $0x48c] ss:$16 sps:$4 sm:$0xff]   ;;  %v2990_v29 = vld [vmem:[#allocation2 + $0x480] ss:$16 sps:$4 sm:$0xff]  }
  0x80   :  { %1711 = vmatpush1.bf16.msra.mxu0 %v2906_v32  ;;  %1883 = vmatpush1.bf16.msra.mxu1 %v2909_v33  ;;  %v3001_v32 = vld [vmem:[#allocation2 + $0x4ac] ss:$16 sps:$4 sm:$0xff]   ;;  %v2996_v33 = vld [vmem:[#allocation2 + $0x4a0] ss:$16 sps:$4 sm:$0xff]  }
  0x81   :  { %1712 = vmatprep.subr.bf16.mxu0 %v2914_v35  ;;  %1884 = vmatprep.subr.bf16.mxu1 %v2917_v36  ;;  %v3004_v35 = vld [vmem:[#allocation2 + $0x4c4] ss:$16 sps:$4 sm:$0xff]   ;;  %v3007_v36 = vld [vmem:[#allocation2 + $0x4cc] ss:$16 sps:$4 sm:$0xff]  }
  0x84   :  { %1713 = vmatpush1.bf16.msra.mxu0 %v2912_v37  ;;  %1885 = vmatpush1.bf16.msra.mxu1 %v2915_v38  ;;  %v3002_v37 = vld [vmem:[#allocation2 + $0x4c0] ss:$16 sps:$4 sm:$0xff]   ;;  %v3005_v38 = vld [vmem:[#allocation2 + $0x4c8] ss:$16 sps:$4 sm:$0xff]  }
  0x85   :  { %1714 = vmatprep.subr.bf16.mxu0 %v2920_v39  ;;  %1886 = vmatprep.subr.bf16.mxu1 %v2923_v40  ;;  %v3010_v39 = vld [vmem:[#allocation2 + $0x4e4] ss:$16 sps:$4 sm:$0xff]   ;;  %v3013_v40 = vld [vmem:[#allocation2 + $0x4ec] ss:$16 sps:$4 sm:$0xff]  }
  0x88   :  { %1715 = vmatpush1.bf16.msra.mxu0 %v2918_v41  ;;  %1887 = vmatpush1.bf16.msra.mxu1 %v2921_v42  ;;  %v3008_v41 = vld [vmem:[#allocation2 + $0x4e0] ss:$16 sps:$4 sm:$0xff]   ;;  %v3011_v42 = vld [vmem:[#allocation2 + $0x4e8] ss:$16 sps:$4 sm:$0xff]  }
  0x89   :  { %1716 = vmatprep.subr.bf16.mxu0 %v2926_v43  ;;  %1888 = vmatprep.subr.bf16.mxu1 %v2929_v44  ;;  %v3016_v43 = vld [vmem:[#allocation2 + $0x504] ss:$16 sps:$4 sm:$0xff]   ;;  %v3019_v44 = vld [vmem:[#allocation2 + $0x50c] ss:$16 sps:$4 sm:$0xff]  }
  0x8c   :  { %1717 = vmatpush1.bf16.msra.mxu0 %v2924_v45  ;;  %1889 = vmatpush1.bf16.msra.mxu1 %v2927_v46  ;;  %v3014_v45 = vld [vmem:[#allocation2 + $0x500] ss:$16 sps:$4 sm:$0xff]   ;;  %v3017_v46 = vld [vmem:[#allocation2 + $0x508] ss:$16 sps:$4 sm:$0xff]  }
  0x8d   :  { %1718 = vmatprep.subr.bf16.mxu0 %v2932_v47  ;;  %1890 = vmatprep.subr.bf16.mxu1 %v2935_v48  ;;  %v3022_v47 = vld [vmem:[#allocation2 + $0x524] ss:$16 sps:$4 sm:$0xff]   ;;  %v3025_v48 = vld [vmem:[#allocation2 + $0x52c] ss:$16 sps:$4 sm:$0xff]  }
  0x90   :  { %1719 = vmatpush1.bf16.msra.mxu0 %v2930_v49  ;;  %1891 = vmatpush1.bf16.msra.mxu1 %v2933_v50  ;;  %v3020_v49 = vld [vmem:[#allocation2 + $0x520] ss:$16 sps:$4 sm:$0xff]   ;;  %v3023_v50 = vld [vmem:[#allocation2 + $0x528] ss:$16 sps:$4 sm:$0xff]  }
  0x91   :  { %1720 = vmatprep.subr.bf16.mxu0 %v2938_v51  ;;  %1892 = vmatprep.subr.bf16.mxu1 %v2941_v52  ;;  %v3028_v51 = vld [vmem:[#allocation2 + $0x544] ss:$16 sps:$4 sm:$0xff]   ;;  %v3031_v52 = vld [vmem:[#allocation2 + $0x54c] ss:$16 sps:$4 sm:$0xff]  }
  0x94   :  { %1721 = vmatpush1.bf16.msra.mxu0 %v2936_v53  ;;  %1893 = vmatpush1.bf16.msra.mxu1 %v2939_v54  ;;  %v3026_v53 = vld [vmem:[#allocation2 + $0x540] ss:$16 sps:$4 sm:$0xff]   ;;  %v3029_v54 = vld [vmem:[#allocation2 + $0x548] ss:$16 sps:$4 sm:$0xff]  }
  0x95   :  { %1722 = vmatprep.subr.bf16.mxu0 %v2944_v55  ;;  %1894 = vmatprep.subr.bf16.mxu1 %v2947_v56  ;;  %v3034_v55 = vld [vmem:[#allocation2 + $0x564] ss:$16 sps:$4 sm:$0xff]   ;;  %v3037_v56 = vld [vmem:[#allocation2 + $0x56c] ss:$16 sps:$4 sm:$0xff]  }
  0x98   :  { %1723 = vmatpush1.bf16.msra.mxu0 %v2942_v57  ;;  %1895 = vmatpush1.bf16.msra.mxu1 %v2945_v58  ;;  %v3032_v57 = vld [vmem:[#allocation2 + $0x560] ss:$16 sps:$4 sm:$0xff]   ;;  %v3035_v58 = vld [vmem:[#allocation2 + $0x568] ss:$16 sps:$4 sm:$0xff]  }
  0x99   :  { %1724 = vmatprep.subr.bf16.mxu0 %v2950_v59  ;;  %1896 = vmatprep.subr.bf16.mxu1 %v2953_v60  ;;  %v3040_v59 = vld [vmem:[#allocation2 + $0x584] ss:$16 sps:$4 sm:$0xff]   ;;  %v3043_v60 = vld [vmem:[#allocation2 + $0x58c] ss:$16 sps:$4 sm:$0xff]  }
  0x9c   :  { %1725 = vmatpush1.bf16.msra.mxu0 %v2948_v61  ;;  %1897 = vmatpush1.bf16.msra.mxu1 %v2951_v62  ;;  %v3038_v61 = vld [vmem:[#allocation2 + $0x580] ss:$16 sps:$4 sm:$0xff]   ;;  %v3041_v62 = vld [vmem:[#allocation2 + $0x588] ss:$16 sps:$4 sm:$0xff]  }
  0x9d   :  { %1726 = vmatprep.subr.bf16.mxu0 %v2956_v63  ;;  %1898 = vmatprep.subr.bf16.mxu1 %v2959_v0  ;;  %v3046_v63 = vld [vmem:[#allocation2 + $0x5a4] ss:$16 sps:$4 sm:$0xff]   ;;  %v3049_v0 = vld [vmem:[#allocation2 + $0x5ac] ss:$16 sps:$4 sm:$0xff]  }
  0xa0   :  { %1727 = vmatpush1.bf16.msra.mxu0 %v2954_v1  ;;  %1899 = vmatpush1.bf16.msra.mxu1 %v2957_v2  ;;  %v3044_v1 = vld [vmem:[#allocation2 + $0x5a0] ss:$16 sps:$4 sm:$0xff]   ;;  %v3047_v2 = vld [vmem:[#allocation2 + $0x5a8] ss:$16 sps:$4 sm:$0xff]  }
  0xa1   :  { %1728 = vmatprep.subr.bf16.mxu0 %v2962_v3  ;;  %1900 = vmatprep.subr.bf16.mxu1 %v2965_v4  ;;  %v3052_v3 = vld [vmem:[#allocation2 + $0x5c4] ss:$16 sps:$4 sm:$0xff]   ;;  %v3055_v4 = vld [vmem:[#allocation2 + $0x5cc] ss:$16 sps:$4 sm:$0xff]  }
  0xa4   :  { %1729 = vmatpush1.bf16.msra.mxu0 %v2960_v5  ;;  %1901 = vmatpush1.bf16.msra.mxu1 %v2963_v6  ;;  %v3050_v5 = vld [vmem:[#allocation2 + $0x5c0] ss:$16 sps:$4 sm:$0xff]   ;;  %v3053_v6 = vld [vmem:[#allocation2 + $0x5c8] ss:$16 sps:$4 sm:$0xff]  }
  0xa5   :  { %1741 = vmatprep.subr.bf16.mxu0 %v2968_v7  ;;  %1913 = vmatprep.subr.bf16.mxu1 %v2971_v8  ;;  %v3058_v7 = vld [vmem:[#allocation2 + $0x5e4] ss:$16 sps:$4 sm:$0xff]   ;;  %v3061_v8 = vld [vmem:[#allocation2 + $0x5ec] ss:$16 sps:$4 sm:$0xff]  }
  0xa7   :  { %1731 = vmatmul.mubr.bf16.vlgmr.msra.gmra.mrb[0].mxu0 %v2386_v9  ;;  %1903 = vmatmul.mubr.bf16.vlgmr.msra.gmra.mrb[0].mxu1 %v2386_v9  ;;  %v3056_v9 = vld [vmem:[#allocation2 + $0x5e0] ss:$16 sps:$4 sm:$0xff]  }
  0xa8   :  { %1742 = vmatpush1.bf16.msra.mxu0 %v2966_v10  ;;  %1914 = vmatpush1.bf16.msra.mxu1 %v2969_v11  ;;  %v3059_v10 = vld [vmem:[#allocation2 + $0x5e8] ss:$16 sps:$4 sm:$0xff]   ;;  %v3064_v11 = vld [vmem:[#allocation2 + $0x604] ss:$16 sps:$4 sm:$0xff]  }
  0xa9   :  { %1743 = vmatprep.subr.bf16.mxu0 %v2974_v12  ;;  %1915 = vmatprep.subr.bf16.mxu1 %v2977_v13  ;;  %v3067_v12 = vld [vmem:[#allocation2 + $0x60c] ss:$16 sps:$4 sm:$0xff]   ;;  %v3062_v13 = vld [vmem:[#allocation2 + $0x600] ss:$16 sps:$4 sm:$0xff]  }
  0xaa   :  { %1773 = vmatprep.mubr.bf16.mxu0 %v2389_v16  ;;  %1945 = vmatprep.mubr.bf16.mxu1 %v2389_v16  ;;  %v3065_v16 = vld [vmem:[#allocation2 + $0x608] ss:$16 sps:$4 sm:$0xff]  }
  0xac   :  { %1744 = vmatpush1.bf16.msra.mxu0 %v2972_v17  ;;  %1916 = vmatpush1.bf16.msra.mxu1 %v2975_v18  ;;  %v3341_v17 = vld [vmem:[%s3363_s0 + $0x18] sm:$0xff]  ;;  %v2388_v18 = vcombine.low %v3329_v14, %v3334_v15  ;;  %v3074_v15 = vld [vmem:[#allocation2 + $0x640] ss:$16 sps:$4 sm:$0xff]  }
  0xad   :  { %1745 = vmatprep.subr.bf16.mxu0 %v2980_v19  ;;  %1917 = vmatprep.subr.bf16.mxu1 %v2983_v20  ;;  %v3348_v19 = vld [vmem:[%s3363_s0 + $0x38] sm:$0xff]  ;;  %v3070_v20 = vld [vmem:[#allocation2 + $0x624] ss:$16 sps:$4 sm:$0xff]  }
  0xae   :  { %v3079_v14 = vld [vmem:[#allocation2 + $0x64c] ss:$16 sps:$4 sm:$0xff]  }
  0xb0   :  { %1746 = vmatpush1.bf16.msra.mxu0 %v2978_v21  ;;  %1918 = vmatpush1.bf16.msra.mxu1 %v2981_v22  ;;  %v3073_v21 = vld [vmem:[#allocation2 + $0x62c] ss:$16 sps:$4 sm:$0xff]   ;;  %v3068_v22 = vld [vmem:[#allocation2 + $0x620] ss:$16 sps:$4 sm:$0xff]  }
  0xb1   :  { %1747 = vmatprep.subr.bf16.mxu0 %v2986_v23  ;;  %1919 = vmatprep.subr.bf16.mxu1 %v2989_v24  ;;  %v3071_v23 = vld [vmem:[#allocation2 + $0x628] ss:$16 sps:$4 sm:$0xff]   ;;  %v2391_v24 = vcombine.high %v3341_v17, %v3348_v19 }
  0xb4   :  { %1748 = vmatpush1.bf16.msra.mxu0 %v2984_v25  ;;  %1920 = vmatpush1.bf16.msra.mxu1 %v2987_v26  ;;  %v3076_v25 = vld [vmem:[#allocation2 + $0x644] ss:$16 sps:$4 sm:$0xff]   ;;  %v3077_v26 = vld [vmem:[#allocation2 + $0x648] ss:$16 sps:$4 sm:$0xff]  }
  0xb5   :  { %1749 = vmatprep.subr.bf16.mxu0 %v2992_v27  ;;  %1921 = vmatprep.subr.bf16.mxu1 %v2995_v28  ;;  %v3082_v27 = vld [vmem:[#allocation2 + $0x664] ss:$16 sps:$4 sm:$0xff]   ;;  %v3085_v28 = vld [vmem:[#allocation2 + $0x66c] ss:$16 sps:$4 sm:$0xff]  }
  0xb8   :  { %1750 = vmatpush1.bf16.msra.mxu0 %v2990_v29  ;;  %1922 = vmatpush1.bf16.msra.mxu1 %v2993_v30  ;;  %v3080_v29 = vld [vmem:[#allocation2 + $0x660] ss:$16 sps:$4 sm:$0xff]   ;;  %v3083_v30 = vld [vmem:[#allocation2 + $0x668] ss:$16 sps:$4 sm:$0xff]  }
  0xb9   :  { %1751 = vmatprep.subr.bf16.mxu0 %v2998_v31  ;;  %1923 = vmatprep.subr.bf16.mxu1 %v3001_v32  ;;  %v3088_v31 = vld [vmem:[#allocation2 + $0x684] ss:$16 sps:$4 sm:$0xff]   ;;  %v3091_v32 = vld [vmem:[#allocation2 + $0x68c] ss:$16 sps:$4 sm:$0xff]  }
  0xbc   :  { %1752 = vmatpush1.bf16.msra.mxu0 %v2996_v33  ;;  %1924 = vmatpush1.bf16.msra.mxu1 %v2999_v34  ;;  %v3086_v33 = vld [vmem:[#allocation2 + $0x680] ss:$16 sps:$4 sm:$0xff]   ;;  %v3089_v34 = vld [vmem:[#allocation2 + $0x688] ss:$16 sps:$4 sm:$0xff]  }
  0xbd   :  { %1753 = vmatprep.subr.bf16.mxu0 %v3004_v35  ;;  %1925 = vmatprep.subr.bf16.mxu1 %v3007_v36  ;;  %v3094_v35 = vld [vmem:[#allocation2 + $0x6a4] ss:$16 sps:$4 sm:$0xff]   ;;  %v3097_v36 = vld [vmem:[#allocation2 + $0x6ac] ss:$16 sps:$4 sm:$0xff]  }
  0xc0   :  { %1754 = vmatpush1.bf16.msra.mxu0 %v3002_v37  ;;  %1926 = vmatpush1.bf16.msra.mxu1 %v3005_v38  ;;  %v3092_v37 = vld [vmem:[#allocation2 + $0x6a0] ss:$16 sps:$4 sm:$0xff]   ;;  %v3095_v38 = vld [vmem:[#allocation2 + $0x6a8] ss:$16 sps:$4 sm:$0xff]  }
  0xc1   :  { %1755 = vmatprep.subr.bf16.mxu0 %v3010_v39  ;;  %1927 = vmatprep.subr.bf16.mxu1 %v3013_v40  ;;  %v3100_v39 = vld [vmem:[#allocation2 + $0x6c4] ss:$16 sps:$4 sm:$0xff]   ;;  %v3103_v40 = vld [vmem:[#allocation2 + $0x6cc] ss:$16 sps:$4 sm:$0xff]  }
  0xc4   :  { %1756 = vmatpush1.bf16.msra.mxu0 %v3008_v41  ;;  %1928 = vmatpush1.bf16.msra.mxu1 %v3011_v42  ;;  %v3098_v41 = vld [vmem:[#allocation2 + $0x6c0] ss:$16 sps:$4 sm:$0xff]   ;;  %v3101_v42 = vld [vmem:[#allocation2 + $0x6c8] ss:$16 sps:$4 sm:$0xff]  }
  0xc5   :  { %1757 = vmatprep.subr.bf16.mxu0 %v3016_v43  ;;  %1929 = vmatprep.subr.bf16.mxu1 %v3019_v44  ;;  %v3106_v43 = vld [vmem:[#allocation2 + $0x6e4] ss:$16 sps:$4 sm:$0xff]   ;;  %v3109_v44 = vld [vmem:[#allocation2 + $0x6ec] ss:$16 sps:$4 sm:$0xff]  }
  0xc8   :  { %1758 = vmatpush1.bf16.msra.mxu0 %v3014_v45  ;;  %1930 = vmatpush1.bf16.msra.mxu1 %v3017_v46  ;;  %v3104_v45 = vld [vmem:[#allocation2 + $0x6e0] ss:$16 sps:$4 sm:$0xff]   ;;  %v3107_v46 = vld [vmem:[#allocation2 + $0x6e8] ss:$16 sps:$4 sm:$0xff]  }
  0xc9   :  { %1759 = vmatprep.subr.bf16.mxu0 %v3022_v47  ;;  %1931 = vmatprep.subr.bf16.mxu1 %v3025_v48  ;;  %v3112_v47 = vld [vmem:[#allocation2 + $0x704] ss:$16 sps:$4 sm:$0xff]   ;;  %v3115_v48 = vld [vmem:[#allocation2 + $0x70c] ss:$16 sps:$4 sm:$0xff]  }
  0xcc   :  { %1760 = vmatpush1.bf16.msra.mxu0 %v3020_v49  ;;  %1932 = vmatpush1.bf16.msra.mxu1 %v3023_v50  ;;  %v3110_v49 = vld [vmem:[#allocation2 + $0x700] ss:$16 sps:$4 sm:$0xff]   ;;  %v3113_v50 = vld [vmem:[#allocation2 + $0x708] ss:$16 sps:$4 sm:$0xff]  }
  0xcd   :  { %1761 = vmatprep.subr.bf16.mxu0 %v3028_v51  ;;  %1933 = vmatprep.subr.bf16.mxu1 %v3031_v52  ;;  %v3118_v51 = vld [vmem:[#allocation2 + $0x724] ss:$16 sps:$4 sm:$0xff]   ;;  %v3121_v52 = vld [vmem:[#allocation2 + $0x72c] ss:$16 sps:$4 sm:$0xff]  }
  0xd0   :  { %1762 = vmatpush1.bf16.msra.mxu0 %v3026_v53  ;;  %1934 = vmatpush1.bf16.msra.mxu1 %v3029_v54  ;;  %v3116_v53 = vld [vmem:[#allocation2 + $0x720] ss:$16 sps:$4 sm:$0xff]   ;;  %v3119_v54 = vld [vmem:[#allocation2 + $0x728] ss:$16 sps:$4 sm:$0xff]  }
  0xd1   :  { %1763 = vmatprep.subr.bf16.mxu0 %v3034_v55  ;;  %1935 = vmatprep.subr.bf16.mxu1 %v3037_v56  ;;  %v3124_v55 = vld [vmem:[#allocation2 + $0x744] ss:$16 sps:$4 sm:$0xff]   ;;  %v3127_v56 = vld [vmem:[#allocation2 + $0x74c] ss:$16 sps:$4 sm:$0xff]  }
  0xd4   :  { %1764 = vmatpush1.bf16.msra.mxu0 %v3032_v57  ;;  %1936 = vmatpush1.bf16.msra.mxu1 %v3035_v58  ;;  %v3122_v57 = vld [vmem:[#allocation2 + $0x740] ss:$16 sps:$4 sm:$0xff]   ;;  %v3125_v58 = vld [vmem:[#allocation2 + $0x748] ss:$16 sps:$4 sm:$0xff]  }
  0xd5   :  { %1765 = vmatprep.subr.bf16.mxu0 %v3040_v59  ;;  %1937 = vmatprep.subr.bf16.mxu1 %v3043_v60  ;;  %v3130_v59 = vld [vmem:[#allocation2 + $0x764] ss:$16 sps:$4 sm:$0xff]   ;;  %v3133_v60 = vld [vmem:[#allocation2 + $0x76c] ss:$16 sps:$4 sm:$0xff]  }
  0xd8   :  { %1766 = vmatpush1.bf16.msra.mxu0 %v3038_v61  ;;  %1938 = vmatpush1.bf16.msra.mxu1 %v3041_v62  ;;  %v3128_v61 = vld [vmem:[#allocation2 + $0x760] ss:$16 sps:$4 sm:$0xff]   ;;  %v3131_v62 = vld [vmem:[#allocation2 + $0x768] ss:$16 sps:$4 sm:$0xff]  }
  0xd9   :  { %1767 = vmatprep.subr.bf16.mxu0 %v3046_v63  ;;  %1939 = vmatprep.subr.bf16.mxu1 %v3049_v0  ;;  %v3136_v63 = vld [vmem:[#allocation2 + $0x784] ss:$16 sps:$4 sm:$0xff]   ;;  %v3139_v0 = vld [vmem:[#allocation2 + $0x78c] ss:$16 sps:$4 sm:$0xff]  }
  0xdc   :  { %1768 = vmatpush1.bf16.msra.mxu0 %v3044_v1  ;;  %1940 = vmatpush1.bf16.msra.mxu1 %v3047_v2  ;;  %v3134_v1 = vld [vmem:[#allocation2 + $0x780] ss:$16 sps:$4 sm:$0xff]   ;;  %v3137_v2 = vld [vmem:[#allocation2 + $0x788] ss:$16 sps:$4 sm:$0xff]  }
  0xdd   :  { %1769 = vmatprep.subr.bf16.mxu0 %v3052_v3  ;;  %1941 = vmatprep.subr.bf16.mxu1 %v3055_v4  ;;  %v3142_v3 = vld [vmem:[#allocation2 + $0x7a4] ss:$16 sps:$4 sm:$0xff]   ;;  %v3145_v4 = vld [vmem:[#allocation2 + $0x7ac] ss:$16 sps:$4 sm:$0xff]  }
  0xe0   :  { %1770 = vmatpush1.bf16.msra.mxu0 %v3050_v5  ;;  %1942 = vmatpush1.bf16.msra.mxu1 %v3053_v6  ;;  %v3140_v5 = vld [vmem:[#allocation2 + $0x7a0] ss:$16 sps:$4 sm:$0xff]   ;;  %v3143_v6 = vld [vmem:[#allocation2 + $0x7a8] ss:$16 sps:$4 sm:$0xff]  }
  0xe1   :  { %1771 = vmatprep.subr.bf16.mxu0 %v3058_v7  ;;  %1943 = vmatprep.subr.bf16.mxu1 %v3061_v8  ;;  %v3148_v7 = vld [vmem:[#allocation2 + $0x7c4] ss:$16 sps:$4 sm:$0xff]   ;;  %v3151_v8 = vld [vmem:[#allocation2 + $0x7cc] ss:$16 sps:$4 sm:$0xff]  }
  0xe4   :  { %1772 = vmatpush1.bf16.msra.mxu0 %v3056_v9  ;;  %1944 = vmatpush1.bf16.msra.mxu1 %v3059_v10  ;;  %v3146_v9 = vld [vmem:[#allocation2 + $0x7c0] ss:$16 sps:$4 sm:$0xff]   ;;  %v3149_v10 = vld [vmem:[#allocation2 + $0x7c8] ss:$16 sps:$4 sm:$0xff]  }
  0xe5   :  { %1784 = vmatprep.subr.bf16.mxu0 %v3064_v11  ;;  %1956 = vmatprep.subr.bf16.mxu1 %v3067_v12  ;;  %v3154_v11 = vld [vmem:[#allocation2 + $0x7e4] ss:$16 sps:$4 sm:$0xff]   ;;  %v3157_v12 = vld [vmem:[#allocation2 + $0x7ec] ss:$16 sps:$4 sm:$0xff]  }
  0xe7   :  { %1774 = vmatmul.mubr.bf16.vlgmr.msra.gmra.mrb[0].mxu0 %v2388_v18  ;;  %1946 = vmatmul.mubr.bf16.vlgmr.msra.gmra.mrb[0].mxu1 %v2388_v18  ;;  %v3158_v18 = vld [vmem:[#allocation4 + $0x40] sm:$0xff]  }
  0xe8   :  { %1785 = vmatpush1.bf16.msra.mxu0 %v3062_v13  ;;  %1957 = vmatpush1.bf16.msra.mxu1 %v3065_v16  ;;  %v3152_v13 = vld [vmem:[#allocation2 + $0x7e0] ss:$16 sps:$4 sm:$0xff]   ;;  %v3155_v16 = vld [vmem:[#allocation2 + $0x7e8] ss:$16 sps:$4 sm:$0xff]  }
  0xe9   :  { %1786 = vmatprep.subr.bf16.mxu0 %v3070_v20  ;;  %1958 = vmatprep.subr.bf16.mxu1 %v3073_v21  ;;  %v3159_v20 = vld [vmem:[#allocation4 + $0xc0] sm:$0xff]   ;;  %v2390_v21 = vcombine.low %v3341_v17, %v3348_v19  ;;  %v3168_v17 = vld [vmem:[#allocation4 + $0x10] sm:$0xff]  }
  0xea   :  { %1816 = vmatprep.mubr.bf16.mxu0 %v2391_v24  ;;  %1988 = vmatprep.mubr.bf16.mxu1 %v2391_v24  ;;  %v3162_v24 = vld [vmem:[#allocation4 + $0x48] sm:$0xff]   ;;  %v3169_v19 = vld [vmem:[#allocation4 + $0x90] sm:$0xff]  }
  0xec   :  { %1787 = vmatpush1.bf16.msra.mxu0 %v3068_v22  ;;  %1959 = vmatpush1.bf16.msra.mxu1 %v3071_v23  ;;  %v3160_v22 = vld [vmem:[#allocation4] sm:$0xff]  }
  0xed   :  { %1788 = vmatprep.subr.bf16.mxu0 %v3076_v25  ;;  %1960 = vmatprep.subr.bf16.mxu1 %v3079_v14  ;;  %v3161_v23 = vld [vmem:[#allocation4 + $0x80] sm:$0xff]   ;;  %v3163_v25 = vld [vmem:[#allocation4 + $0xc8] sm:$0xff]  }
  0xee   :  { %v3164_v14 = vld [vmem:[#allocation4 + $0x8] sm:$0xff]  }
  0xf0   :  { %1789 = vmatpush1.bf16.msra.mxu0 %v3074_v15  ;;  %1961 = vmatpush1.bf16.msra.mxu1 %v3077_v26  ;;  %v3165_v15 = vld [vmem:[#allocation4 + $0x88] sm:$0xff]   ;;  %v3166_v26 = vld [vmem:[#allocation4 + $0x50] sm:$0xff]  }
  0xf1   :  { %1790 = vmatprep.subr.bf16.mxu0 %v3082_v27  ;;  %1962 = vmatprep.subr.bf16.mxu1 %v3085_v28  ;;  %v3167_v27 = vld [vmem:[#allocation4 + $0xd0] sm:$0xff]   ;;  %v3170_v28 = vld [vmem:[#allocation4 + $0x58] sm:$0xff]  }
  0xf4   :  { %1791 = vmatpush1.bf16.msra.mxu0 %v3080_v29  ;;  %1963 = vmatpush1.bf16.msra.mxu1 %v3083_v30  ;;  %v3171_v29 = vld [vmem:[#allocation4 + $0xd8] sm:$0xff]  }
  0xf5   :  { %1792 = vmatprep.subr.bf16.mxu0 %v3088_v31  ;;  %1964 = vmatprep.subr.bf16.mxu1 %v3091_v32  ;;  %v3172_v30 = vld [vmem:[#allocation4 + $0x18] sm:$0xff]   ;;  %v3174_v32 = vld [vmem:[#allocation4 + $0x60] sm:$0xff]  }
  0xf6   :  { %v3173_v31 = vld [vmem:[#allocation4 + $0x98] sm:$0xff]  }
  0xf8   :  { %1793 = vmatpush1.bf16.msra.mxu0 %v3086_v33  ;;  %1965 = vmatpush1.bf16.msra.mxu1 %v3089_v34  ;;  %v3175_v33 = vld [vmem:[#allocation4 + $0xe0] sm:$0xff]  }
  0xf9   :  { %1794 = vmatprep.subr.bf16.mxu0 %v3094_v35  ;;  %1966 = vmatprep.subr.bf16.mxu1 %v3097_v36  ;;  %v3176_v34 = vld [vmem:[#allocation4 + $0x20] sm:$0xff]   ;;  %v3178_v36 = vld [vmem:[#allocation4 + $0x68] sm:$0xff]  }
  0xfa   :  { %v3177_v35 = vld [vmem:[#allocation4 + $0xa0] sm:$0xff]  }
  0xfc   :  { %1795 = vmatpush1.bf16.msra.mxu0 %v3092_v37  ;;  %1967 = vmatpush1.bf16.msra.mxu1 %v3095_v38  ;;  %v3179_v37 = vld [vmem:[#allocation4 + $0xe8] sm:$0xff]  }
  0xfd   :  { %1796 = vmatprep.subr.bf16.mxu0 %v3100_v39  ;;  %1968 = vmatprep.subr.bf16.mxu1 %v3103_v40  ;;  %v3180_v38 = vld [vmem:[#allocation4 + $0x28] sm:$0xff]   ;;  %v3182_v40 = vld [vmem:[#allocation4 + $0x70] sm:$0xff]  }
  0xfe   :  { %v3181_v39 = vld [vmem:[#allocation4 + $0xa8] sm:$0xff]  }
 0x100   :  { %1797 = vmatpush1.bf16.msra.mxu0 %v3098_v41  ;;  %1969 = vmatpush1.bf16.msra.mxu1 %v3101_v42  ;;  %v3183_v41 = vld [vmem:[#allocation4 + $0xf0] sm:$0xff]  }
 0x101   :  { %1798 = vmatprep.subr.bf16.mxu0 %v3106_v43  ;;  %1970 = vmatprep.subr.bf16.mxu1 %v3109_v44  ;;  %v3184_v42 = vld [vmem:[#allocation4 + $0x30] sm:$0xff]   ;;  %v3186_v44 = vld [vmem:[#allocation4 + $0x78] sm:$0xff]  }
 0x102   :  { %v3185_v43 = vld [vmem:[#allocation4 + $0xb0] sm:$0xff]  }
 0x104   :  { %1799 = vmatpush1.bf16.msra.mxu0 %v3104_v45  ;;  %1971 = vmatpush1.bf16.msra.mxu1 %v3107_v46  ;;  %v3187_v45 = vld [vmem:[#allocation4 + $0xf8] sm:$0xff]  }
 0x105   :  { %1800 = vmatprep.subr.bf16.mxu0 %v3112_v47  ;;  %1972 = vmatprep.subr.bf16.mxu1 %v3115_v48  ;;  %v3188_v46 = vld [vmem:[#allocation4 + $0x38] sm:$0xff]   ;;  %v315_v48 = vlaneseq }
 0x106   :  { %v3189_v47 = vld [vmem:[#allocation4 + $0xb8] sm:$0xff]  }
 0x108   :  { %1801 = vmatpush1.bf16.msra.mxu0 %v3110_v49  ;;  %1973 = vmatpush1.bf16.msra.mxu1 %v3113_v50  ;;  %v316_v49 = vshrl.u32 %v315_v48, 7 }
 0x109   :  { %1802 = vmatprep.subr.bf16.mxu0 %v3118_v51  ;;  %1974 = vmatprep.subr.bf16.mxu1 %v3121_v52  ;;  %v313_v52 = vld [vmem:[%s3365_s2] sm:$0xf] }
 0x10a   :  { %v317_v50 = vsub.s32 0, %v316_v49  ;;  %v325_v51 = vsub.s32 2, %v316_v49 }
 0x10c   :  { %1803 = vmatpush1.bf16.msra.mxu0 %v3116_v53  ;;  %1975 = vmatpush1.bf16.msra.mxu1 %v3119_v54  ;;  %v321_v53 = vsub.s32 1, %v316_v49  ;;  %v329_v54 = vsub.s32 3, %v316_v49 }
 0x10d   :  { %1804 = vmatprep.subr.bf16.mxu0 %v3124_v55  ;;  %1976 = vmatprep.subr.bf16.mxu1 %v3127_v56  ;;  %v318_v55 = vrot.slane %v313_v52, %v317_v50  ;;  %v326_v56 = vrot.slane %v313_v52, %v325_v51 }
 0x110   :  { %1805 = vmatpush1.bf16.msra.mxu0 %v3122_v57  ;;  %1977 = vmatpush1.bf16.msra.mxu1 %v3125_v58  ;;  %v322_v57 = vrot.slane %v313_v52, %v321_v53  ;;  %v330_v58 = vrot.slane %v313_v52, %v329_v54 }
 0x111   :  { %1806 = vmatprep.subr.bf16.mxu0 %v3130_v59  ;;  %1978 = vmatprep.subr.bf16.mxu1 %v3133_v60 }
 0x114   :  { %1807 = vmatpush1.bf16.msra.mxu0 %v3128_v61  ;;  %1979 = vmatpush1.bf16.msra.mxu1 %v3131_v62 }
 0x115   :  { %1808 = vmatprep.subr.bf16.mxu0 %v3136_v63  ;;  %1980 = vmatprep.subr.bf16.mxu1 %v3139_v0 }
 0x118   :  { %1809 = vmatpush1.bf16.msra.mxu0 %v3134_v1  ;;  %1981 = vmatpush1.bf16.msra.mxu1 %v3137_v2 }
 0x119   :  { %1810 = vmatprep.subr.bf16.mxu0 %v3142_v3  ;;  %1982 = vmatprep.subr.bf16.mxu1 %v3145_v4 }
 0x11c   :  { %1811 = vmatpush1.bf16.msra.mxu0 %v3140_v5  ;;  %1983 = vmatpush1.bf16.msra.mxu1 %v3143_v6 }
 0x11d   :  { %1812 = vmatprep.subr.bf16.mxu0 %v3148_v7  ;;  %1984 = vmatprep.subr.bf16.mxu1 %v3151_v8 }
 0x120   :  { %1813 = vmatpush1.bf16.msra.mxu0 %v3146_v9  ;;  %1985 = vmatpush1.bf16.msra.mxu1 %v3149_v10 }
 0x121   :  { %1814 = vmatprep.subr.bf16.mxu0 %v3154_v11  ;;  %1986 = vmatprep.subr.bf16.mxu1 %v3157_v12 }
 0x124   :  { %1815 = vmatpush1.bf16.msra.mxu0 %v3152_v13  ;;  %1987 = vmatpush1.bf16.msra.mxu1 %v3155_v16 }
 0x125   :  { %2692 = vmatprep.subr.bf16.mxu0 %v3158_v18  ;;  %2714 = vmatprep.subr.bf16.mxu1 %v3159_v20 }
 0x127   :  { %1817 = vmatmul.mubr.bf16.vlgmr.msra.gmra.mrb[0].mxu0 %v2390_v21  ;;  %1989 = vmatmul.mubr.bf16.vlgmr.msra.gmra.mrb[0].mxu1 %v2390_v21 }
 0x128   :  { %2693 = vmatpush3.bf16.msra.mxu0 %v3160_v22  ;;  %2715 = vmatpush3.bf16.msra.mxu1 %v3161_v23 }
 0x129   :  { %2694 = vmatprep.subr.bf16.mxu0 %v3162_v24  ;;  %2716 = vmatprep.subr.bf16.mxu1 %v3163_v25 }
 0x12c   :  { %2695 = vmatpush3.bf16.msra.mxu0 %v3164_v14  ;;  %2717 = vmatpush3.bf16.msra.mxu1 %v3165_v15 }
 0x12d   :  { %2696 = vmatprep.subr.bf16.mxu0 %v3166_v26  ;;  %2718 = vmatprep.subr.bf16.mxu1 %v3167_v27  ;;  %v2648_v27 = vld [vmem:[%s3367_s4] ss:$0 sm:$0xff] }
 0x130   :  { %2697 = vmatpush3.bf16.msra.mxu0 %v3168_v17  ;;  %2719 = vmatpush3.bf16.msra.mxu1 %v3169_v19 }
 0x131   :  { %2698 = vmatprep.subr.bf16.mxu0 %v3170_v28  ;;  %2720 = vmatprep.subr.bf16.mxu1 %v3171_v29 }
 0x134   :  { %2699 = vmatpush3.bf16.msra.mxu0 %v3172_v30  ;;  %2721 = vmatpush3.bf16.msra.mxu1 %v3173_v31 }
 0x135   :  { %2700 = vmatprep.subr.bf16.mxu0 %v3174_v32  ;;  %2722 = vmatprep.subr.bf16.mxu1 %v3175_v33 }
 0x138   :  { %2701 = vmatpush3.bf16.msra.mxu0 %v3176_v34  ;;  %2723 = vmatpush3.bf16.msra.mxu1 %v3177_v35 }
 0x139   :  { %2702 = vmatprep.subr.bf16.mxu0 %v3178_v36  ;;  %2724 = vmatprep.subr.bf16.mxu1 %v3179_v37 }
 0x13c   :  { %2703 = vmatpush3.bf16.msra.mxu0 %v3180_v38  ;;  %2725 = vmatpush3.bf16.msra.mxu1 %v3181_v39 }
 0x13d   :  { %2704 = vmatprep.subr.bf16.mxu0 %v3182_v40  ;;  %2726 = vmatprep.subr.bf16.mxu1 %v3183_v41 }
 0x140   :  { %2705 = vmatpush3.bf16.msra.mxu0 %v3184_v42  ;;  %2727 = vmatpush3.bf16.msra.mxu1 %v3185_v43 }
 0x141   :  { %2706 = vmatprep.subr.bf16.mxu0 %v3186_v44  ;;  %2728 = vmatprep.subr.bf16.mxu1 %v3187_v45 }
 0x144   :  { %2707 = vmatpush3.bf16.msra.mxu0 %v3188_v46  ;;  %2729 = vmatpush3.bf16.msra.mxu1 %v3189_v47 }
 0x1fa   :  { %v1818_v59 = vpop.f32.mrb[0].mxu0  ;;  %v1990_v60 = vpop.f32.mrb[0].mxu1 }
 0x1fb   :  { %v2736_v61 = vadd.f32 %v1818_v59, %v318_v55  ;;  %v2740_v62 = vadd.f32 %v1990_v60, %v326_v56  ;;  %v1820_v63 = vpop.f32.mrb[1].mxu0  ;;  %v1992_v0 = vpop.f32.mrb[1].mxu1 }
 0x1fc   :  { %v2737_v1 = vadd.f32 %v1820_v63, %v322_v57  ;;  %v2741_v2 = vadd.f32 %v1992_v0, %v330_v58  ;;  %v1822_v3 = vpop.f32.mrb[2].mxu0  ;;  %v1994_v4 = vpop.f32.mrb[2].mxu1 }
 0x1fd   :  { %v2738_v5 = vadd.f32 %v1822_v3, %v318_v55  ;;  %v2742_v6 = vadd.f32 %v1994_v4, %v326_v56  ;;  %v1824_v7 = vpop.f32.mrb[3].mxu0  ;;  %v1996_v8 = vpop.f32.mrb[3].mxu1  ;;  %v1999_v11 = vmax.f32 %v2736_v61, 0.0  ;;  %v2001_v12 = vmax.f32 %v2740_v62, 0.0 }
 0x1fe   :  { %v2739_v9 = vadd.f32 %v1824_v7, %v322_v57  ;;  %v2743_v10 = vadd.f32 %v1996_v8, %v330_v58  ;;  %v2000_v18 = vmax.f32 %v2737_v1, 0.0  ;;  %v2002_v20 = vmax.f32 %v2741_v2, 0.0 }
 0x1ff   :  { %v2003_v13 = vmax.f32 %v2738_v5, 0.0  ;;  %v2005_v16 = vmax.f32 %v2742_v6, 0.0 }
 0x200   :  { %v2004_v21 = vmax.f32 %v2739_v9, 0.0  ;;  %v2006_v22 = vmax.f32 %v2743_v10, 0.0 }
 0x201   :  { %v2007_v23 = vpack.c.bf16 %v2003_v13, %v1999_v11  ;;  %v2009_v24 = vpack.c.bf16 %v2005_v16, %v2001_v12 }
 0x202   :  { %v2008_v25 = vpack.c.bf16 %v2004_v21, %v2000_v18  ;;  %v2010_v14 = vpack.c.bf16 %v2006_v22, %v2002_v20 }
 0x204   :  { %2306 = vmatprep.mubr.bf16.mxu0 %v2008_v25  ;;  %2347 = vmatprep.mubr.bf16.mxu1 %v2010_v14 }
 0x205   :  { %2307 = vmatmul.mubr.bf16.vlgmr.msra.gmra.mrb[4].mxu0 %v2007_v23  ;;  %2348 = vmatmul.mubr.bf16.vlgmr.msra.gmra.mrb[4].mxu1 %v2009_v24 }
 0x2d8   :  { %v2708_v15 = vpop.f32.mrb[4].mxu0  ;;  %v2730_v26 = vpop.f32.mrb[4].mxu1 }
 0x2d9   :  { %v2709_v17 = vpop.f32.mrb[5].mxu0  ;;  %v2731_v19 = vpop.f32.mrb[5].mxu1 }
 0x2da   :  { %v2710_v28 = vadd.f32 %v2709_v17, %v2708_v15  ;;  %v2732_v29 = vadd.f32 %v2731_v19, %v2730_v26  ;;  %v2711_v30 = vpop.f32.mrb[6].mxu0  ;;  %v2733_v31 = vpop.f32.mrb[6].mxu1 }
 0x2db   :  { %v2712_v32 = vpop.f32.mrb[7].mxu0  ;;  %v2734_v33 = vpop.f32.mrb[7].mxu1 }
 0x2dc   :  { %v2309_v34 = vadd.f32 %v2710_v28, %v2648_v27  ;;  %v2713_v35 = vadd.f32 %v2712_v32, %v2711_v30  ;;  %v2735_v36 = vadd.f32 %v2734_v33, %v2733_v31 }
 0x2de   :  { %v2350_v37 = vadd.f32 %v2732_v29, %v2309_v34  ;;  %v2312_v38 = vadd.f32 %v2713_v35, %v2648_v27 }
 0x2e0   :  { %v2681_v39 = vmul.f32 -1.442695, %v2350_v37  ;;  %v2353_v40 = vadd.f32 %v2735_v36, %v2312_v38 }
 0x2e2   :  { %3190 = vpow2.f32 %v2681_v39  ;;  %v2682_v41 = vmul.f32 -1.442695, %v2353_v40 }
 0x2e4   :  { %3192 = vpow2.f32 %v2682_v41 }
 0x2ec   :  { %v3191_v42 = vpop.eup %3190 }
 0x2ed   :  { %v2362_v43 = vadd.f32 1.0, %v3191_v42 }
 0x2ee   :  { %v3193_v44 = vpop.eup %3192 }
 0x2ef   :  { %v2363_v45 = vadd.f32 1.0, %v3193_v44  ;;  %3194 = vrcp.f32 %v2362_v43 }
 0x2f1   :  { %3196 = vrcp.f32 %v2363_v45 }
 0x2f9   :  { %v3195_v46 = vpop.eup %3194 }
 0x2fb   :  { %v3197_v47 = vpop.eup %3196 }
 0x2fc   :  { %v2690_v48 = vpack.c.bf16 %v3197_v47, %v3195_v46 }
 0x2fe   :  { %2691 = vst [vmem:[%s3368_s5] sm:$0xff] %v2690_v48  }
 0x2ff   :  { %2382 = vsyncpa [#allocation3], 1 }
 0x300   :  { %2383 = vsyncpa [#allocation5], 1 }

</bundles_post_ra>
